<compile_context>
chip_gen: v6e
topology: v6e:2x2x1
jax: 0.10.0
libtpu: 0.0.40
codegen_flags: <defaults>
</compile_context>

<pallas_src>
import functools

import jax
import jax.numpy as jnp
from jax import lax
from jax.experimental import pallas as pl
from jax.experimental.pallas import tpu as pltpu


# ----------------------------------------------------------------------------
# VMEM limit: derive from the actual chip, leave headroom for compiler scratch.
# ----------------------------------------------------------------------------
@functools.lru_cache(maxsize=None)
def _vmem_limit_bytes():
    cap = 128 * 1024 * 1024
    try:
        info = pltpu.get_tpu_info()
        cap = int(getattr(info, "vmem_capacity_bytes", cap) or cap)
    except Exception:
        pass
    # ~96 MiB on v5e/v6e (128 MiB physical), ~48 MiB on v7x (64 MiB physical).
    return int(min(96 * 1024 * 1024, cap * 3 // 4))


def _pick_tile(dim, candidates):
    """Largest candidate tile that divides `dim`, else the full extent
    (full extent always satisfies the (8,128) BlockSpec rule)."""
    for c in candidates:
        if dim % c == 0:
            return c
    return dim


# ----------------------------------------------------------------------------
# Tiled linear kernel:  o = act(x @ w + b)   (bf16 weights, f32 accumulation)
# The activation tile is cast to the weight dtype inside VMEM (no HBM round trip).
# ----------------------------------------------------------------------------
def _linear_kernel(x_ref, w_ref, b_ref, o_ref, acc_ref, *, activation):
    @pl.when(pl.program_id(2) == 0)
    def _init():
        acc_ref[...] = jnp.zeros_like(acc_ref)

    acc_ref[...] += jnp.dot(x_ref[...].astype(w_ref.dtype), w_ref[...],
                            preferred_element_type=jnp.float32)

    @pl.when(pl.program_id(2) == pl.num_programs(2) - 1)
    def _finalize():
        y = acc_ref[...] + b_ref[...]
        if activation is not None:
            y = activation(y)
        o_ref[...] = y.astype(o_ref.dtype)


def pallas_linear(x, w, b, *, activation=None, out_dtype=jnp.float32):
    """x: [M, K], w: [K, N] (any dtype, e.g. bf16), b: [1, N] f32  ->  [M, N]."""
    M, K = x.shape
    N = w.shape[1]
    tm = _pick_tile(M, (1024, 512, 256, 128, 64, 32, 16, 8))
    tn = _pick_tile(N, (256, 128))
    tk = _pick_tile(K, (512, 256, 128))
    grid = (M // tm, N // tn, K // tk)
    kernel = functools.partial(_linear_kernel, activation=activation)
    cost = pl.CostEstimate(
        flops=int(2 * M * N * K),
        transcendentals=int(M * N if activation is not None else 0),
        bytes_accessed=int(M * K * x.dtype.itemsize + K * N * w.dtype.itemsize
                           + M * N * jnp.dtype(out_dtype).itemsize + N * 4))
    return pl.pallas_call(
        kernel,
        out_shape=jax.ShapeDtypeStruct((M, N), out_dtype),
        grid=grid,
        in_specs=[
            pl.BlockSpec((tm, tk), lambda i, j, k: (i, k)),
            pl.BlockSpec((tk, tn), lambda i, j, k: (k, j)),
            pl.BlockSpec((1, tn), lambda i, j, k: (0, j)),
        ],
        out_specs=pl.BlockSpec((tm, tn), lambda i, j, k: (i, j)),
        scratch_shapes=[pltpu.VMEM((tm, tn), jnp.float32)],
        compiler_params=pltpu.CompilerParams(
            dimension_semantics=("parallel", "parallel", "arbitrary"),
            vmem_limit_bytes=_vmem_limit_bytes()),
        cost_estimate=cost,
    )(x, w, b)


# ----------------------------------------------------------------------------
# Grouped linear:  out[g] = x @ w[g] + b[g]   (g = GRU direction)
# Reuses _linear_kernel: the leading group dim is squeezed out by the BlockSpec.
# ----------------------------------------------------------------------------
def pallas_grouped_linear(x, w, b, *, out_dtype=jnp.float32):
    """x: [M, K]; w: [G, K, N]; b: [G, 1, N]  ->  [G, M, N]."""
    M, K = x.shape
    G, _, N = w.shape
    tm = _pick_tile(M, (1024, 512, 256, 128, 64, 32, 16, 8))
    tk = _pick_tile(K, (512, 256, 128))
    grid = (G, M // tm, K // tk)
    kernel = functools.partial(_linear_kernel, activation=None)
    cost = pl.CostEstimate(
        flops=int(2 * G * M * N * K),
        transcendentals=0,
        bytes_accessed=int(G * M * K * x.dtype.itemsize + G * K * N * w.dtype.itemsize
                           + G * M * N * jnp.dtype(out_dtype).itemsize))
    return pl.pallas_call(
        kernel,
        out_shape=jax.ShapeDtypeStruct((G, M, N), out_dtype),
        grid=grid,
        in_specs=[
            pl.BlockSpec((tm, tk), lambda g, i, k: (i, k)),
            pl.BlockSpec((None, tk, N), lambda g, i, k: (g, k, 0)),
            pl.BlockSpec((None, 1, N), lambda g, i, k: (g, 0, 0)),
        ],
        out_specs=pl.BlockSpec((None, tm, N), lambda g, i, k: (g, i, 0)),
        scratch_shapes=[pltpu.VMEM((tm, N), jnp.float32)],
        compiler_params=pltpu.CompilerParams(
            dimension_semantics=("parallel", "parallel", "arbitrary"),
            vmem_limit_bytes=_vmem_limit_bytes()),
        cost_estimate=cost,
    )(x, w, b)


# ----------------------------------------------------------------------------
# Bidirectional GRU recurrence (PyTorch gate semantics: r, z, n), streamed over T.
#   grid = (direction, T-chunk); direction is "parallel" (v7x megacore),
#   time is "arbitrary" with the hidden state carried in a VMEM scratch.
#   For the backward direction the index_map reverses the chunk order and the
#   in-chunk loop walks the chunk backwards, so no x[::-1] copies are needed.
# ----------------------------------------------------------------------------
def _bigru_recurrence_kernel(xg_ref, wh_ref, bh_ref, hseq_ref, h_scr, *, tc, H):
    d = pl.program_id(0)

    @pl.when(pl.program_id(1) == 0)
    def _init():
        h_scr[...] = jnp.zeros_like(h_scr)

    # Hoisted loop invariants.
    wh = wh_ref[...]          # [H, 3H] bf16
    bh = bh_ref[...]          # [1, 3H] f32
    H2 = 2 * H

    def step(s, h):
        # fwd (d==0) walks the chunk forward, bwd (d==1) walks it backwards.
        idx = jnp.where(d == 0, s, tc - 1 - s)
        xg_t = xg_ref[idx]                                    # [B, 3H] = W_i x + b_i
        hg = jnp.dot(h.astype(wh.dtype), wh,
                     preferred_element_type=jnp.float32) + bh  # [B, 3H] = W_h h + b_h
        rz = jax.nn.sigmoid(xg_t[:, :H2] + hg[:, :H2])
        r, z = rz[:, :H], rz[:, H:]
        n = jnp.tanh(xg_t[:, H2:] + r * hg[:, H2:])
        h_new = (1.0 - z) * n + z * h
        hseq_ref[idx] = h_new                                 # time-aligned state
        return h_new

    # Only the short per-chunk loop is unrolled (tc <= 16).
    h_scr[...] = lax.fori_loop(0, tc, step, h_scr[...], unroll=True)


def run_bigru_recurrence(xg, wh, bh, *, T, B, H, tc):
    nT = T // tc
    H3 = 3 * H
    kernel = functools.partial(_bigru_recurrence_kernel, tc=tc, H=H)

    def t_idx(d, t):
        # bwd direction consumes time chunks in reverse so the scratch carry
        # flows backwards through time.
        return jnp.where(d == 0, t, nT - 1 - t)

    cost = pl.CostEstimate(
        flops=int(2 * 2 * T * B * H * H3 + 20 * T * B * H3),
        transcendentals=int(2 * T * B * H3),
        bytes_accessed=int(2 * T * B * H3 * xg.dtype.itemsize
                           + 2 * T * B * H * 4 + 2 * H * H3 * wh.dtype.itemsize))

    return pl.pallas_call(
        kernel,
        out_shape=jax.ShapeDtypeStruct((2, T, B, H), jnp.float32),
        grid=(2, nT),
        in_specs=[
            pl.BlockSpec((None, tc, B, H3), lambda d, t: (d, t_idx(d, t), 0, 0)),
            pl.BlockSpec((None, H, H3), lambda d, t: (d, 0, 0)),
            pl.BlockSpec((None, 1, H3), lambda d, t: (d, 0, 0)),
        ],
        out_specs=pl.BlockSpec((None, tc, B, H), lambda d, t: (d, t_idx(d, t), 0, 0)),
        scratch_shapes=[pltpu.VMEM((B, H), jnp.float32)],
        compiler_params=pltpu.CompilerParams(
            dimension_semantics=("parallel", "arbitrary"),
            vmem_limit_bytes=_vmem_limit_bytes()),
        cost_estimate=cost,
    )(xg, wh, bh)


def run_bigru_layer(x_flat, p, *, T, B, H, tc):
    # Input-side projections for every timestep / gate / direction: one tiled,
    # pipelined MXU matmul straight to HBM (b_i folded in), layout [dir, T*B, 3H].
    xg = pallas_grouped_linear(x_flat, p["wi"], p["bi"])         # f32
    xg = xg.reshape(2, T, B, 3 * H)                              # free reshape
    return run_bigru_recurrence(xg, p["wh"], p["bh"], T=T, B=B, H=H, tc=tc)


# ----------------------------------------------------------------------------
# Frozen synthetic BERT embedder (bert(text)[0]) — plain-JAX glue except that
# every dense projection runs through the tiled Pallas linear kernel.
# ----------------------------------------------------------------------------
def layer_norm(x, g, b, eps=1e-12):
    mu = jnp.mean(x, axis=-1, keepdims=True)
    var = jnp.mean((x - mu) ** 2, axis=-1, keepdims=True)
    return (x - mu) / jnp.sqrt(var + eps) * g + b


def _gelu(x):
    # TODO(synk): PyTorch nn.GELU defaults to exact erf; the tanh approximation
    # is used here for a guaranteed Mosaic lowering inside the fused kernel.
    return jax.nn.gelu(x, approximate=True)


def bert_encoder(text, bp):
    B, S = text.shape
    E = bp["tok_emb"].shape[1]
    n_heads = bp["n_heads"]
    dH = E // n_heads

    h = bp["tok_emb"][text] + bp["pos_emb"][None, :S, :]
    h = layer_norm(h, bp["ln0_g"], bp["ln0_b"])

    for lyr in bp["layers"]:
        x2d = h.reshape(B * S, E)
        # fused QKV projection: one [B*S, E] x [E, 3E] kernel, bf16 writeback
        qkv = pallas_linear(x2d, lyr["wqkv"], lyr["bqkv"], out_dtype=jnp.bfloat16)
        q, k, v = jnp.split(qkv, 3, axis=-1)
        q = q.reshape(B, S, n_heads, dH).transpose(0, 2, 1, 3)
        k = k.reshape(B, S, n_heads, dH).transpose(0, 2, 1, 3)
        v = v.reshape(B, S, n_heads, dH).transpose(0, 2, 1, 3)
        # TODO(synk): move attention (QK^T / softmax / PV) + residual LayerNorm into a
        # flash-attention-style Pallas kernel; plain JAX materializes [B,h,S,S] in HBM.
        # TODO(synk): no attention_mask applied (reference calls bert(text) without one).
        scores = jnp.einsum("bhqd,bhkd->bhqk", q, k,
                            preferred_element_type=jnp.float32) / jnp.sqrt(float(dH))
        attn = jax.nn.softmax(scores, axis=-1)
        ctx = jnp.einsum("bhqk,bhkd->bhqd", attn.astype(v.dtype), v)   # bf16
        ctx = ctx.transpose(0, 2, 1, 3).reshape(B * S, E)
        attn_out = pallas_linear(ctx, lyr["wo"], lyr["bo"]).reshape(B, S, E)
        h = layer_norm(h + attn_out, lyr["ln1_g"], lyr["ln1_b"])

        # FFN: first linear fuses GELU and writes the biggest activation as bf16
        ff = pallas_linear(h.reshape(B * S, E), lyr["w1"], lyr["b1"],
                           activation=_gelu, out_dtype=jnp.bfloat16)
        ff = pallas_linear(ff, lyr["w2"], lyr["b2"]).reshape(B, S, E)
        h = layer_norm(h + ff, lyr["ln2_g"], lyr["ln2_b"])
    return h  # [B, S, E] f32


# ----------------------------------------------------------------------------
# BERTGRUSentiment forward
# ----------------------------------------------------------------------------
def gru_bidirectional(embedded_bse, gru_layers, hidden_dim):
    B, S, E = embedded_bse.shape
    T, H = S, hidden_dim
    tc = _pick_tile(T, (16, 8, 4, 2))                 # time-chunk streamed per grid step
    # time-major, flattened once (row t*B + b == (t, b))
    x = jnp.transpose(embedded_bse, (1, 0, 2)).reshape(T * B, E)
    hseq = None
    for p in gru_layers:
        hseq = run_bigru_layer(x, p, T=T, B=B, H=H, tc=tc)       # [2, T, B, H]
        # next-layer input: concat fwd/bwd features (one cheap plain-JAX pass)
        x = jnp.concatenate([hseq[0], hseq[1]], axis=-1).reshape(T * B, 2 * H)
        # NOTE: nn.GRU inter-layer dropout is inactive in eval mode -> omitted.
    # == torch.cat((hidden[-2], hidden[-1]), dim=1)
    h_fwd_last = hseq[0, T - 1]    # fwd state after time T-1
    h_bwd_last = hseq[1, 0]        # bwd state after its last step (time 0)
    return jnp.concatenate([h_fwd_last, h_bwd_last], axis=1)     # [B, 2H]


def bert_gru_sentiment_forward(text, params, hidden_dim):
    # with torch.no_grad(): embedded = bert(text)[0]
    embedded = bert_encoder(text, params["bert"])                 # [B, S, E]
    hidden = gru_bidirectional(embedded, params["gru_layers"], hidden_dim)
    # TODO(synk): nn.Dropout applied as eval-mode identity (inference semantics).
    # out_dim is tiny (1): a Pallas launch would be all masked lane-1 stores, so the
    # classifier runs as a plain-JAX matmul.
    return hidden @ params["out_w"] + params["out_b"]             # [B, out_dim]


# ----------------------------------------------------------------------------
# Deterministic parameter construction (fused, direction-major layouts, bf16 weights)
# ----------------------------------------------------------------------------
def _pack_bigru_layer(pf, pb, H):
    """Pack per-direction GRU weights into the fused-kernel layout.

    Direction-major: wi[d] = [W_ir | W_iz | W_in] (each H wide), likewise wh/bh,
    so the recurrence does a single dense [B,H]x[H,3H] matmul per step per direction.
    Weights bf16 (MXU-native), biases f32.
    """
    def gates(p, keys):
        return jnp.concatenate([p[k] for k in keys], axis=1)

    wi = jnp.stack([gates(pf, ("wir", "wiz", "win")),
                    gates(pb, ("wir", "wiz", "win"))])            # [2, E_in, 3H]
    bi = jnp.stack([gates(pf, ("bir", "biz", "bin")),
                    gates(pb, ("bir", "biz", "bin"))])            # [2, 1, 3H]
    wh = jnp.stack([gates(pf, ("whr", "whz", "whn")),
                    gates(pb, ("whr", "whz", "whn"))])            # [2, H, 3H]
    bh = jnp.stack([gates(pf, ("bhr", "bhz", "bhn")),
                    gates(pb, ("bhr", "bhz", "bhn"))])            # [2, 1, 3H]
    return dict(wi=wi.astype(jnp.bfloat16), bi=bi,
                wh=wh.astype(jnp.bfloat16), bh=bh)


def init_params(key, *, vocab, max_pos, E, n_heads, ffn, n_bert_layers,
                hidden_dim, n_gru_layers, out_dim):
    keys = iter(jax.random.split(key, 512))

    def nrm(shape, scale=0.05):
        return (scale * jax.random.normal(next(keys), shape)).astype(jnp.float32)

    bert = dict(
        tok_emb=nrm((vocab, E)),
        pos_emb=nrm((max_pos, E)),
        ln0_g=jnp.ones((E,), jnp.float32),
        ln0_b=jnp.zeros((E,), jnp.float32),
        n_heads=n_heads,
        layers=[],
    )
    for _ in range(n_bert_layers):
        wq, wk, wv = nrm((E, E)), nrm((E, E)), nrm((E, E))
        bert["layers"].append(dict(
            # frozen weights stored bf16 once at init (no per-forward re-casts)
            wqkv=jnp.concatenate([wq, wk, wv], axis=1).astype(jnp.bfloat16),
            bqkv=jnp.zeros((1, 3 * E), jnp.float32),
            wo=nrm((E, E)).astype(jnp.bfloat16), bo=jnp.zeros((1, E), jnp.float32),
            ln1_g=jnp.ones((E,), jnp.float32), ln1_b=jnp.zeros((E,), jnp.float32),
            w1=nrm((E, ffn)).astype(jnp.bfloat16), b1=jnp.zeros((1, ffn), jnp.float32),
            w2=nrm((ffn, E)).astype(jnp.bfloat16), b2=jnp.zeros((1, E), jnp.float32),
            ln2_g=jnp.ones((E,), jnp.float32), ln2_b=jnp.zeros((E,), jnp.float32),
        ))

    H = hidden_dim
    gru_layers = []
    for layer in range(n_gru_layers):
        in_dim = E if layer == 0 else 2 * H
        raw = {}
        for d in ("fwd", "bwd"):
            raw[d] = dict(
                wir=nrm((in_dim, H)), wiz=nrm((in_dim, H)), win=nrm((in_dim, H)),
                whr=nrm((H, H)), whz=nrm((H, H)), whn=nrm((H, H)),
                bir=nrm((1, H)), biz=nrm((1, H)), bin=nrm((1, H)),
                bhr=nrm((1, H)), bhz=nrm((1, H)), bhn=nrm((1, H)),
            )
        gru_layers.append(_pack_bigru_layer(raw["fwd"], raw["bwd"], H))

    # TODO(synk): pad hidden_dim to a multiple of 128 in production configs so the
    # GRU gate slices / hseq stores are lane-dense.
    return dict(
        bert=bert,
        gru_layers=gru_layers,
        out_w=nrm((2 * H, out_dim)),
        out_b=jnp.zeros((1, out_dim), jnp.float32),
    )


# ----------------------------------------------------------------------------
if __name__ == "__main__":
    # small shapes consistent with the module
    B, S = 2, 8                 # batch, sequence length
    E = 32                      # bert hidden_size (embedding_dim)
    HIDDEN_DIM = 16             # GRU hidden_dim
    N_GRU_LAYERS = 2            # n_layers
    OUT_DIM = 1                 # output_dim
    VOCAB, MAX_POS = 100, 32
    N_HEADS, FFN, N_BERT_LAYERS = 2, 64, 2

    root = jax.random.PRNGKey(0)
    k_param, k_text = jax.random.split(root)
    params = init_params(
        k_param, vocab=VOCAB, max_pos=MAX_POS, E=E, n_heads=N_HEADS, ffn=FFN,
        n_bert_layers=N_BERT_LAYERS, hidden_dim=HIDDEN_DIM,
        n_gru_layers=N_GRU_LAYERS, out_dim=OUT_DIM,
    )
    text = jax.random.randint(k_text, (B, S), 0, VOCAB, dtype=jnp.int32)

    out = bert_gru_sentiment_forward(text, params, HIDDEN_DIM)
    out = jax.block_until_ready(out)
    assert out.shape == (B, OUT_DIM), out.shape
    print("KERNEL_OK")
</pallas_src>

<mosaic_0001>
module attributes {stable_mosaic.version = 11 : i64} {
  func.func @_linear_kernel(%arg0: i32, %arg1: i32, %arg2: i32, %arg3: memref<16x32xf32, #tpu.memory_space<vmem>>, %arg4: memref<32x96xbf16, #tpu.memory_space<vmem>>, %arg5: memref<1x96xf32, #tpu.memory_space<vmem>>, %arg6: memref<16x96xbf16, #tpu.memory_space<vmem>>, %arg7: memref<16x96xf32, #tpu.memory_space<vmem>>) attributes {dimension_semantics = [#tpu.dimension_semantics<parallel>, #tpu.dimension_semantics<parallel>, #tpu.dimension_semantics<arbitrary>], iteration_bounds = array<i64: 1, 1, 1>, scalar_prefetch = 0 : i64, scratch_operands = 1 : i64, tpu.core_type = #tpu.core_type<tc>, window_params = [{transform_indices = @transform_0, window_bounds = array<i64: 16, 32>}, {transform_indices = @transform_1, window_bounds = array<i64: 32, 96>}, {transform_indices = @transform_2, window_bounds = array<i64: 1, 96>}, {transform_indices = @transform_3, window_bounds = array<i64: 16, 96>}]} {
    %c0_i32 = arith.constant 0 : i32
    %0 = arith.cmpi eq, %arg2, %c0_i32 : i32
    %1 = arith.extui %0 : i1 to i32
    %c0_i32_0 = arith.constant 0 : i32
    %2 = arith.cmpi ne, %1, %c0_i32_0 : i32
    scf.if %2 {
      %cst_10 = arith.constant 0.000000e+00 : f32
      %13 = vector.broadcast %cst_10 : f32 to vector<16x96xf32>
      %c0_11 = arith.constant 0 : index
      %c0_12 = arith.constant 0 : index
      %14 = vector.load %arg7[%c0_11, %c0_12] : memref<16x96xf32, #tpu.memory_space<vmem>>, vector<16x96xf32>
      tpu.vector_store %arg7[%c0_11, %c0_12], %13 {strides = array<i32>} : memref<16x96xf32, #tpu.memory_space<vmem>>, vector<16x96xf32>,
    } else {
    }
    %c0 = arith.constant 0 : index
    %c0_1 = arith.constant 0 : index
    %3 = vector.load %arg7[%c0, %c0_1] : memref<16x96xf32, #tpu.memory_space<vmem>>, vector<16x96xf32>
    %c0_2 = arith.constant 0 : index
    %c0_3 = arith.constant 0 : index
    %4 = vector.load %arg3[%c0_2, %c0_3] : memref<16x32xf32, #tpu.memory_space<vmem>>, vector<16x32xf32>
    %5 = arith.truncf %4 : vector<16x32xf32> to vector<16x32xbf16>
    %c0_4 = arith.constant 0 : index
    %c0_5 = arith.constant 0 : index
    %6 = vector.load %arg4[%c0_4, %c0_5] : memref<32x96xbf16, #tpu.memory_space<vmem>>, vector<32x96xbf16>
    %cst = arith.constant dense<0.000000e+00> : vector<16x96xf32>
    %7 = tpu.matmul %5, %6, %cst {dimension_numbers = #tpu.dot_dimension_numbers<[1], [0], [0], [1], [0, 0, 1, 1], [], []>} : vector<16x32xbf16>, vector<32x96xbf16>, vector<16x96xf32> -> vector<16x96xf32>
    %8 = arith.addf %3, %7 : vector<16x96xf32>
    %c0_6 = arith.constant 0 : index
    %c0_7 = arith.constant 0 : index
    %9 = vector.load %arg7[%c0_6, %c0_7] : memref<16x96xf32, #tpu.memory_space<vmem>>, vector<16x96xf32>
    tpu.vector_store %arg7[%c0_6, %c0_7], %8 {strides = array<i32>} : memref<16x96xf32, #tpu.memory_space<vmem>>, vector<16x96xf32>,
    %c0_i32_8 = arith.constant 0 : i32
    %10 = arith.cmpi eq, %arg2, %c0_i32_8 : i32
    %11 = arith.extui %10 : i1 to i32
    %c0_i32_9 = arith.constant 0 : i32
    %12 = arith.cmpi ne, %11, %c0_i32_9 : i32
    scf.if %12 {
      %c0_10 = arith.constant 0 : index
      %c0_11 = arith.constant 0 : index
      %13 = vector.load %arg7[%c0_10, %c0_11] : memref<16x96xf32, #tpu.memory_space<vmem>>, vector<16x96xf32>
      %c0_12 = arith.constant 0 : index
      %c0_13 = arith.constant 0 : index
      %14 = vector.load %arg5[%c0_12, %c0_13] : memref<1x96xf32, #tpu.memory_space<vmem>>, vector<1x96xf32>
      %15 = vector.broadcast %14 : vector<1x96xf32> to vector<16x96xf32>
      %16 = arith.addf %13, %15 : vector<16x96xf32>
      %17 = arith.truncf %16 : vector<16x96xf32> to vector<16x96xbf16>
      %c0_14 = arith.constant 0 : index
      %c0_15 = arith.constant 0 : index
      %18 = vector.load %arg6[%c0_14, %c0_15] : memref<16x96xbf16, #tpu.memory_space<vmem>>, vector<16x96xbf16>
      tpu.vector_store %arg6[%c0_14, %c0_15], %17 {strides = array<i32>} : memref<16x96xbf16, #tpu.memory_space<vmem>>, vector<16x96xbf16>,
    } else {
    }
    return
  }
  func.func @transform_0(%arg0: i32, %arg1: i32, %arg2: i32) -> (i32, i32) {
    %c0_i32 = arith.constant 0 : i32
    return %arg0, %arg2 : i32, i32
  }
  func.func @transform_1(%arg0: i32, %arg1: i32, %arg2: i32) -> (i32, i32) {
    %c0_i32 = arith.constant 0 : i32
    return %arg2, %arg1 : i32, i32
  }
  func.func @transform_2(%arg0: i32, %arg1: i32, %arg2: i32) -> (i32, i32) {
    %c0_i32 = arith.constant 0 : i32
    %c0_i32_0 = arith.constant 0 : i32
    return %c0_i32, %arg1 : i32, i32
  }
  func.func @transform_3(%arg0: i32, %arg1: i32, %arg2: i32) -> (i32, i32) {
    %c0_i32 = arith.constant 0 : i32
    return %arg0, %arg1 : i32, i32
  }
}

</mosaic_0001>

<bundles_post_ra>
// kernel: tpu_custom_call.1
= control target key start
LH: loop header
LB: loop body
LE: loop exit
PB: predicated region body
PF: predicated region fallthrough
CT: control target
= control target key end

     0   :  { %8 = vsyncpa [#allocation4], 0  ;;  %s312_s0 = inlined_call_operand.hbm [shape: f32[16,32], index: 0, kind: input, shape index: {}]   ;;  %s313_s1 = inlined_call_operand.hbm [shape: bf16[32,96], index: 1, kind: input, shape index: {}]   ;;  %s314_s2 = inlined_call_operand.vmem [shape: f32[1,96], index: 2, kind: input, shape index: {}]   ;;  %s315_s3 = inlined_call_operand.hbm [shape: bf16[16,96], index: 3, kind: output, shape index: {}]  }
   0x1   :  { %9 = vsyncpa [#allocation7], 0 }
   0x2   :  { %10 = vsyncpa [#allocation5], 0  ;;  %s261_s12 = smov [#allocation3]  }
   0x3   :  { %s16_s13 = sshll.u32 %s261_s12, 4  ;;  %s17_s13 = int_to_ptr.vmem [resolvable:$true] %s16_s13 }
   0x4   :  { %s203_s14 = scalar_lea.vmem %s17_s13, 256  ;;  %p208_p1 = scmp.lt.s32.totalorder %s17_s13, %s17_s13 }
   0x5   :  { %p204_p0 = scmp.ne.s32.totalorder %s17_s13, %s203_s14  ;;  %p209_p2 = scmp.lt.s32.totalorder %s203_s14, %s203_s14 }
   0x7   :  { %p210_p3 = por %p209_p2, %p208_p1 }
   0x9   :  { %p211_p4 = pnand %p210_p3, %p204_p0 }
   0xb   :  { %214 = shalt.err (!%p211_p4)
}
   0xc   :  { %s262_s15 = smov 128   ;;  %s263_s16 = smov 8  }
   0xd   :  { %22 = dma.hbm_to_vmem [thread:$0]  %s312_s0, 256, %s17_s13, [#allocation4], %s262_s15, %s262_s15, %s263_s16  }
   0xe   :  { %s264_s19 = smov [#allocation6]  }
   0xf   :  { %s28_s20 = sshll.u32 %s264_s19, 4  ;;  %s29_s20 = int_to_ptr.vmem [resolvable:$true] %s28_s20 }
  0x10   :  { %s223_s21 = scalar_lea.vmem %s29_s20, 256  ;;  %p228_p6 = scmp.lt.s32.totalorder %s29_s20, %s29_s20 }
  0x11   :  { %p224_p5 = scmp.ne.s32.totalorder %s29_s20, %s223_s21  ;;  %p229_p7 = scmp.lt.s32.totalorder %s223_s21, %s223_s21 }
  0x13   :  { %p230_p8 = por %p229_p7, %p228_p6 }
  0x15   :  { %p231_p9 = pnand %p230_p8, %p224_p5 }
  0x17   :  { %234 = shalt.err (!%p231_p9)
}
  0x18   :  { %s265_s22 = smov 64   ;;  %s266_s23 = smov 4  }
  0x19   :  { %34 = dma.hbm_to_vmem [thread:$0]  %s313_s1, 256, %s29_s20, [#allocation7], %s265_s22, %s265_s22, %s266_s23  }
  0x1a   :  { %255 = dma.done.wait [#allocation4], 256  }
  0x1b   :  { %256 = vsyncadd [#allocation4], 4294967040 }
  0x1c   :  { %257 = dma.done.wait [#allocation7], 256  }
  0x1d   :  { %258 = vsyncadd [#allocation7], 4294967040  ;;  %vm48_vm0 = vcmask 785408   ;;  %v267_v0 = vmov 0.0   ;;  %vm268_vm1 = vmmov 0   ;;  %v193_v1 = vld [vmem:[#allocation6 + $0x8] sm:$0xff]  }
  0x1e   :  { %49 = vst.msk [vmem:[#allocation2] sm:$0xff] %vm48_vm0, %v267_v0  ;;  %50 = vst.msk [vmem:[#allocation2 + $0x8] sm:$0xff] %vm48_vm0, %v267_v0  ;;  %176 = vmatprep.subr.bf16.mxu0 %v267_v0  ;;  %180 = vmatprep.mubr.msk.bf16.mxu0 %vm268_vm1, %v267_v0  ;;  %v194_v2 = vld [vmem:[#allocation6] sm:$0xff]   ;;  %v53_v3 = vld [vmem:[#allocation3] sm:$0xff]  ;;  %vm72_vm2 = vcmask 261120   ;;  %vm144_vm3 = vcmask 781312  }
  0x1f   :  { %177 = vmatpush3.bf16.msra.mxu0 %v193_v1  ;;  %v54_v4 = vld [vmem:[#allocation3 + $0x8] sm:$0xff]  ;;  %v168_v14 = vld [vmem:[%s314_s2] ss:$0 sm:$0xff]  ;;  %s269_s26 = smov [#allocation8]  }
  0x20   :  { %178 = vmatprep.subr.bf16.mxu0 %v267_v0  ;;  %v55_v5 = vpack.c.bf16 %v54_v4, %v53_v3  ;;  %s152_s27 = sshll.u32 %s269_s26, 4  ;;  %s153_s27 = int_to_ptr.vmem [resolvable:$true] %s152_s27 }
  0x21   :  { %s235_s28 = scalar_lea.vmem %s153_s27, 128  ;;  %p240_p11 = scmp.lt.s32.totalorder %s153_s27, %s153_s27 }
  0x22   :  { %p236_p10 = scmp.ne.s32.totalorder %s153_s27, %s235_s28  ;;  %p241_p12 = scmp.lt.s32.totalorder %s235_s28, %s235_s28 }
  0x23   :  { %179 = vmatpush3.bf16.msra.mxu0 %v194_v2 }
  0x24   :  { %p242_p13 = por %p241_p12, %p240_p11 }
  0x25   :  { %v51_v6 = vld [vmem:[#allocation2] sm:$0xff]  ;;  %v52_v10 = vld [vmem:[#allocation2 + $0x8] sm:$0xff] }
  0x26   :  { %181 = vmatmul.mubr.msk.bf16.vlgmr.msra.gmra.mxu0 %vm72_vm2, %v55_v5  ;;  %p243_p0 = pnand %p242_p13, %p236_p10 }
  0xe6   :  { %v110_v7 = vpop.f32.mrf.mxu0 }
  0xe7   :  { %v117_v8 = vadd.f32 %v110_v7, %v51_v6 }
  0xe8   :  { %v182_v9 = vpop.f32.mrf.mxu0 }
  0xe9   :  { %120 = vst.msk [vmem:[#allocation2] sm:$0xff] %vm48_vm0, %v117_v8 }
  0xea   :  { %v113_v11 = vpop.f32.mrf.mxu0 }
  0xeb   :  { %v118_v12 = vadd.f32 %v113_v11, %v52_v10 }
  0xec   :  { %v183_v13 = vpop.f32.mrf.mxu0 }
  0xed   :  { %121 = vst.msk [vmem:[#allocation2 + $0x8] sm:$0xff] %vm48_vm0, %v118_v12 }
  0xf0   :  { %v125_v15 = vld [vmem:[#allocation2] sm:$0xff] }
  0xf1   :  { %v134_v16 = vadd.f32 %v168_v14, %v125_v15 }
  0xf3   :  { %v171_v17 = vpack.c.bf16 %v134_v16, %v134_v16 }
  0xf4   :  { %v126_v18 = vld [vmem:[#allocation2 + $0x8] sm:$0xff] }
  0xf5   :  { %v135_v19 = vadd.f32 %v168_v14, %v126_v18  ;;  %145 = vst.msk [vmem:[#allocation8] sm:$0xf] %vm144_vm3, %v171_v17 }
  0xf7   :  { %v172_v20 = vpack.c.bf16 %v135_v19, %v135_v19 }
  0xf9   :  { %146 = vst.msk [vmem:[#allocation8 + $0x4] sm:$0xf] %vm144_vm3, %v172_v20 }
  0xfa   :  { %246 = shalt.err (!%p243_p0)
}
  0xfb   :  { %158 = dma.vmem_to_hbm [thread:$0]  %s153_s27, 128, %s315_s3, [#allocation5], %s265_s22, %s265_s22, %s266_s23  }
  0xfc   :  { %259 = dma.done.wait [#allocation5], 128  }
  0xfd   :  { %260 = vsyncadd [#allocation5], 4294967168 }
  0xfe   :  { %162 = vsyncpa [#allocation4], 1 }
  0xff   :  { %163 = vsyncpa [#allocation7], 1 }
 0x100   :  { %164 = vsyncpa [#allocation5], 1 }

</bundles_post_ra>
